<compile_context>
chip_gen: v5e
topology: v5e:2x2
jax: 0.10.0
libtpu: 0.0.40
codegen_flags: <defaults>
</compile_context>

<pallas_src>
import jax
import jax.numpy as jnp
from jax.experimental import pallas as pl
from jax.experimental.pallas import tpu as pltpu


def _round_up(x, m):
    return (x + m - 1) // m * m


def _pick_batch_tile(B):
    """tb that is a multiple of 8 dividing B and leaves >=2 batch tiles
    (v7x megacore); otherwise the full batch in one tile (always legal)."""
    cands = [t for t in range(8, min(B // 2, 32) + 1, 8) if B % t == 0]
    if cands:
        return max(cands)
    return B


def _pick_seq_tile(S, ts_cap):
    """Seq tile: full S if it fits, else the largest 128-multiple divisor of S
    (mask lane constraint), else a 128-multiple tile that requires padding."""
    if S <= ts_cap:
        return S, False
    t = (ts_cap // 128) * 128
    while t >= 128:
        if S % t == 0:
            return t, False
        t -= 128
    return max(128, (ts_cap // 128) * 128), True


def pool_fc_kernel(mask_ref, h_ref, cnt_ref, w_ref, b_ref, out_ref, acc_ref):
    """Grid = (batch_tiles, seq_tiles); seq is the reduction ("arbitrary") axis.

    mask_ref: (tb, ts)     same dtype as hidden (0/1, exact in bf16)
    h_ref:    (tb, ts, H)  bf16 (or f32 -- kernel is dtype agnostic)
    cnt_ref:  (tb, 1)      f32   valid-token counts (precomputed, clamped)
    w_ref:    (H, Tp)      bf16  (resident; same block every step)
    b_ref:    (1, Tp)      f32
    out_ref:  (tb, Tp)     f32   (resident across seq axis)
    acc_ref:  (tb, H)      f32   scratch -- masked-sum accumulator
    """
    s = pl.program_id(1)

    @pl.when(s == 0)
    def _init():
        acc_ref[...] = jnp.zeros_like(acc_ref)

    # Masked sum over this seq tile as an MXU contraction with f32 accumulation.
    # (M=1 batched matmul; hidden under DMA on a bandwidth-bound kernel.)
    pooled = jnp.einsum(
        "bqs,bsh->bqh",
        mask_ref[...][:, None, :],            # (tb, 1, ts)
        h_ref[...],                           # (tb, ts, H)
        preferred_element_type=jnp.float32,
    )                                          # (tb, 1, H)
    acc_ref[...] += pooled[:, 0, :]

    @pl.when(s == pl.num_programs(1) - 1)
    def _finalize():
        # Exact division (counts are exact integers; runs once per batch tile).
        feature = acc_ref[...] / cnt_ref[...]                      # (tb, H) f32
        logits = jnp.dot(feature, w_ref[...].astype(jnp.float32),
                         preferred_element_type=jnp.float32)       # (tb, Tp)
        out_ref[...] = logits + b_ref[...]


def custom_model_head(attention_mask, last_hidden_state, fc_w, fc_b):
    """Masked mean pooling + fc head as a tiled, pipelined Pallas kernel."""
    B, S, H = last_hidden_state.shape
    T = fc_w.shape[-1]
    LANE = 128
    Tp = _round_up(T, LANE)

    h = last_hidden_state                     # no cast: read producer dtype as-is
    h_itemsize = jnp.dtype(h.dtype).itemsize

    # ---- tile / VMEM budgeting (generation-aware) -------------------------
    tb = _pick_batch_tile(B)

    try:
        vmem_cap = pltpu.get_tpu_info().vmem_capacity_bytes
    except Exception:                          # pragma: no cover - defensive
        vmem_cap = 64 << 20
    vmem_limit = min(int(vmem_cap * 3 // 4), 100 << 20)   # ~48 MiB v7x, ~96 MiB v5e/v6e

    def _budget(tb_):
        fixed = 2 * H * Tp * 2                 # bf16 weight buffers
        fixed += 2 * tb_ * Tp * 4              # output block
        fixed += tb_ * H * 4                   # f32 accumulator scratch
        fixed += 2 * Tp * 4 + 2 * tb_ * 4      # bias + counts
        return max(vmem_limit - fixed - (4 << 20), 1 << 20)

    # Shrink tb first only if even a 128-token double-buffered tile would not fit.
    while tb > 8 and tb % 16 == 0 and \
            2 * 128 * (tb * H * h_itemsize + tb * h_itemsize) > _budget(tb):
        tb //= 2

    budget = _budget(tb)
    per_token = tb * H * h_itemsize + tb * h_itemsize      # hidden + mask per seq elem
    ts_cap = min(max(budget // (2 * per_token), 128), 2048)

    ts, _ = _pick_seq_tile(S, ts_cap)
    Sp = _round_up(S, ts)
    n_seq_steps = Sp // ts

    # Deeper pipelining of the hidden operand when the reduction is long and fits.
    nbuf = 3 if (n_seq_steps >= 3 and 3 * ts * per_token <= budget) else 2

    # ---- small-side preprocessing (never touches (B,S,H) in the common case) ----
    mask_f = attention_mask.astype(jnp.float32)
    counts = jnp.maximum(mask_f.sum(axis=1, keepdims=True), 1e-9)   # (B,1) f32
    mask = mask_f.astype(h.dtype)                                   # 0/1, exact in bf16

    if Sp != S:
        # Rare: S has no 128-multiple divisor <= ts_cap. Pad hidden too so the
        # accumulator never sees non-finite garbage (mask is zero there anyway).
        h = jnp.pad(h, ((0, 0), (0, Sp - S), (0, 0)))
        mask = jnp.pad(mask, ((0, 0), (0, Sp - S)))

    w = jnp.pad(fc_w.astype(jnp.bfloat16), ((0, 0), (0, Tp - T)))
    b = jnp.pad(fc_b.astype(jnp.float32).reshape(1, -1), ((0, 0), (0, Tp - T)))

    grid = (B // tb, n_seq_steps)

    h_spec_kwargs = {}
    if nbuf > 2:
        h_spec_kwargs["pipeline_mode"] = pl.Buffered(nbuf)

    out = pl.pallas_call(
        pool_fc_kernel,
        out_shape=jax.ShapeDtypeStruct((B, Tp), jnp.float32),
        grid_spec=pltpu.PrefetchScalarGridSpec(
            num_scalar_prefetch=0,
            grid=grid,
            in_specs=[
                pl.BlockSpec((tb, ts), lambda i, s: (i, s)),                  # mask
                pl.BlockSpec((tb, ts, H), lambda i, s: (i, s, 0),
                             **h_spec_kwargs),                                # hidden
                pl.BlockSpec((tb, 1), lambda i, s: (i, 0)),                   # counts
                pl.BlockSpec((H, Tp), lambda i, s: (0, 0)),                   # fc weight
                pl.BlockSpec((1, Tp), lambda i, s: (0, 0)),                   # fc bias
            ],
            out_specs=pl.BlockSpec((tb, Tp), lambda i, s: (i, 0)),            # resident over s
            scratch_shapes=[
                pltpu.VMEM((tb, H), jnp.float32),      # masked-sum accumulator
            ],
        ),
        compiler_params=pltpu.CompilerParams(
            dimension_semantics=("parallel", "arbitrary"),
            vmem_limit_bytes=vmem_limit,
        ),
    )(mask, h, counts, w, b)

    return out[:, :T]


def tiny_backbone(input_ids, emb_table, proj):
    """Deterministic stand-in for the HF backbone (plain-JAX glue).

    # TODO(synk): the real pretrained transformer backbone has no clean
    # in-kernel equivalent; this synthetic encoder only supplies a
    # deterministic last_hidden_state of the right shape.
    """
    emb = jnp.take(emb_table, input_ids, axis=0)          # (B, S, H)
    h = jnp.tanh(emb @ proj)                               # (B, S, H)
    # Producer emits bf16 directly: the head kernel then reads 2 B/elem from HBM
    # with no separate cast/pad pass over the full hidden state.
    return h.astype(jnp.bfloat16)


if __name__ == "__main__":
    # Small, module-consistent shapes
    B, S, H, T = 2, 8, 32, 6        # batch, seq, hidden, n target cols
    VOCAB = 128
    initializer_range = 0.02        # backbone_config.initializer_range

    key = jax.random.PRNGKey(0)
    k_ids, k_emb, k_proj, k_fc = jax.random.split(key, 4)

    # Synthetic tokenized inputs (the `inputs` dict of the module)
    input_ids = jax.random.randint(k_ids, (B, S), 0, VOCAB, dtype=jnp.int32)
    attention_mask = jnp.ones((B, S), dtype=jnp.int32).at[1, 5:].set(0)  # ragged mask

    # Deterministic parameters
    emb_table = initializer_range * jax.random.normal(k_emb, (VOCAB, H), jnp.float32)
    proj = initializer_range * jax.random.normal(k_proj, (H, H), jnp.float32)
    # fc: nn.Linear(pool.output_dim, n_targets); _init_weights -> normal(0, init_range), bias zero
    fc_w = initializer_range * jax.random.normal(k_fc, (H, T), jnp.float32)
    fc_b = jnp.zeros((T,), jnp.float32)

    # "backbone" forward (glue, plain JAX) -- emits bf16 last_hidden_state
    last_hidden_state = tiny_backbone(input_ids, emb_table, proj)

    # Pallas hot path: masked mean pooling + fc
    out = custom_model_head(attention_mask, last_hidden_state, fc_w, fc_b)
    out = jax.block_until_ready(out)

    # Reference in plain JAX, mirroring the kernel's dtypes
    # (bf16 hidden state, bf16 fc weight, f32 accumulation/division).
    h32 = last_hidden_state.astype(jnp.float32)
    m = attention_mask.astype(jnp.float32)
    feat = (h32 * m[:, :, None]).sum(1) / jnp.maximum(m.sum(1, keepdims=True), 1e-9)
    ref = feat @ fc_w.astype(jnp.bfloat16).astype(jnp.float32) + fc_b[None, :]

    assert out.shape == (B, T)
    err = jnp.max(jnp.abs(out - ref))
    assert jnp.allclose(out, ref, atol=1e-4, rtol=1e-3), f"max abs err {err}"

    print("KERNEL_OK")
</pallas_src>

<mosaic_0001>
module attributes {stable_mosaic.version = 11 : i64} {
  func.func @pool_fc_kernel(%arg0: i32, %arg1: i32, %arg2: memref<2x8xbf16, #tpu.memory_space<vmem>>, %arg3: memref<2x8x32xbf16, #tpu.memory_space<vmem>>, %arg4: memref<2x1xf32, #tpu.memory_space<vmem>>, %arg5: memref<32x128xbf16, #tpu.memory_space<vmem>>, %arg6: memref<1x128xf32, #tpu.memory_space<vmem>>, %arg7: memref<2x128xf32, #tpu.memory_space<vmem>>, %arg8: memref<2x32xf32, #tpu.memory_space<vmem>>) attributes {dimension_semantics = [#tpu.dimension_semantics<parallel>, #tpu.dimension_semantics<arbitrary>], iteration_bounds = array<i64: 1, 1>, scalar_prefetch = 0 : i64, scratch_operands = 1 : i64, tpu.core_type = #tpu.core_type<tc>, window_params = [{transform_indices = @transform_0, window_bounds = array<i64: 2, 8>}, {transform_indices = @transform_1, window_bounds = array<i64: 2, 8, 32>}, {transform_indices = @transform_2, window_bounds = array<i64: 2, 1>}, {pipeline_mode = #tpu.pipeline_mode<synchronous>, transform_indices = @transform_3, window_bounds = array<i64: 32, 128>}, {pipeline_mode = #tpu.pipeline_mode<synchronous>, transform_indices = @transform_4, window_bounds = array<i64: 1, 128>}, {transform_indices = @transform_5, window_bounds = array<i64: 2, 128>}]} {
    %c0_i32 = arith.constant 0 : i32
    %0 = arith.cmpi eq, %arg1, %c0_i32 : i32
    %1 = arith.extui %0 : i1 to i32
    %c0_i32_0 = arith.constant 0 : i32
    %2 = arith.cmpi ne, %1, %c0_i32_0 : i32
    scf.if %2 {
      %cst_11 = arith.constant 0.000000e+00 : f32
      %14 = vector.broadcast %cst_11 : f32 to vector<2x32xf32>
      %c0_12 = arith.constant 0 : index
      %c0_13 = arith.constant 0 : index
      %15 = vector.load %arg8[%c0_12, %c0_13] : memref<2x32xf32, #tpu.memory_space<vmem>>, vector<2x32xf32>
      tpu.vector_store %arg8[%c0_12, %c0_13], %14 {strides = array<i32>} : memref<2x32xf32, #tpu.memory_space<vmem>>, vector<2x32xf32>,
    } else {
    }
    %c0 = arith.constant 0 : index
    %c0_1 = arith.constant 0 : index
    %3 = vector.load %arg2[%c0, %c0_1] : memref<2x8xbf16, #tpu.memory_space<vmem>>, vector<2x8xbf16>
    %4 = vector.shape_cast %3 : vector<2x8xbf16> to vector<2x1x8xbf16>
    %c0_2 = arith.constant 0 : index
    %c0_3 = arith.constant 0 : index
    %c0_4 = arith.constant 0 : index
    %5 = vector.load %arg3[%c0_2, %c0_3, %c0_4] : memref<2x8x32xbf16, #tpu.memory_space<vmem>>, vector<2x8x32xbf16>
    "tpu.trace_start"() <{level = 10 : i32, message = "bqs,bsh->bqh"}> : () -> ()
    %cst = arith.constant dense<0.000000e+00> : vector<2x1x32xf32>
    %6 = tpu.matmul %4, %5, %cst {dimension_numbers = #tpu.dot_dimension_numbers<[2], [1], [1], [2], [0, 0, 0, 1, 1, 2], [0], [0]>} : vector<2x1x8xbf16>, vector<2x8x32xbf16>, vector<2x1x32xf32> -> vector<2x1x32xf32>
    "tpu.trace_stop"() : () -> ()
    %c0_5 = arith.constant 0 : index
    %c0_6 = arith.constant 0 : index
    %7 = vector.load %arg8[%c0_5, %c0_6] : memref<2x32xf32, #tpu.memory_space<vmem>>, vector<2x32xf32>
    %8 = vector.shape_cast %6 : vector<2x1x32xf32> to vector<2x32xf32>
    %9 = arith.addf %7, %8 : vector<2x32xf32>
    %c0_7 = arith.constant 0 : index
    %c0_8 = arith.constant 0 : index
    %10 = vector.load %arg8[%c0_7, %c0_8] : memref<2x32xf32, #tpu.memory_space<vmem>>, vector<2x32xf32>
    tpu.vector_store %arg8[%c0_7, %c0_8], %9 {strides = array<i32>} : memref<2x32xf32, #tpu.memory_space<vmem>>, vector<2x32xf32>,
    %c0_i32_9 = arith.constant 0 : i32
    %11 = arith.cmpi eq, %arg1, %c0_i32_9 : i32
    %12 = arith.extui %11 : i1 to i32
    %c0_i32_10 = arith.constant 0 : i32
    %13 = arith.cmpi ne, %12, %c0_i32_10 : i32
    scf.if %13 {
      %c0_11 = arith.constant 0 : index
      %c0_12 = arith.constant 0 : index
      %14 = vector.load %arg8[%c0_11, %c0_12] : memref<2x32xf32, #tpu.memory_space<vmem>>, vector<2x32xf32>
      %c0_13 = arith.constant 0 : index
      %c0_14 = arith.constant 0 : index
      %15 = vector.load %arg4[%c0_13, %c0_14] : memref<2x1xf32, #tpu.memory_space<vmem>>, vector<2x1xf32>
      %16 = vector.broadcast %15 : vector<2x1xf32> to vector<2x32xf32>
      %17 = arith.divf %14, %16 : vector<2x32xf32>
      %c0_15 = arith.constant 0 : index
      %c0_16 = arith.constant 0 : index
      %18 = vector.load %arg5[%c0_15, %c0_16] : memref<32x128xbf16, #tpu.memory_space<vmem>>, vector<32x128xbf16>
      %19 = arith.extf %18 : vector<32x128xbf16> to vector<32x128xf32>
      %cst_17 = arith.constant dense<0.000000e+00> : vector<2x128xf32>
      %20 = tpu.matmul %17, %19, %cst_17 {dimension_numbers = #tpu.dot_dimension_numbers<[1], [0], [0], [1], [0, 0, 1, 1], [], []>} : vector<2x32xf32>, vector<32x128xf32>, vector<2x128xf32> -> vector<2x128xf32>
      %c0_18 = arith.constant 0 : index
      %c0_19 = arith.constant 0 : index
      %21 = vector.load %arg6[%c0_18, %c0_19] : memref<1x128xf32, #tpu.memory_space<vmem>>, vector<1x128xf32>
      %22 = vector.broadcast %21 : vector<1x128xf32> to vector<2x128xf32>
      %23 = arith.addf %20, %22 : vector<2x128xf32>
      %c0_20 = arith.constant 0 : index
      %c0_21 = arith.constant 0 : index
      %24 = vector.load %arg7[%c0_20, %c0_21] : memref<2x128xf32, #tpu.memory_space<vmem>>, vector<2x128xf32>
      tpu.vector_store %arg7[%c0_20, %c0_21], %23 {strides = array<i32>} : memref<2x128xf32, #tpu.memory_space<vmem>>, vector<2x128xf32>,
    } else {
    }
    return
  }
  func.func @transform_0(%arg0: i32, %arg1: i32) -> (i32, i32) {
    %c0_i32 = arith.constant 0 : i32
    return %arg0, %arg1 : i32, i32
  }
  func.func @transform_1(%arg0: i32, %arg1: i32) -> (i32, i32, i32) {
    %c0_i32 = arith.constant 0 : i32
    %c0_i32_0 = arith.constant 0 : i32
    return %arg0, %arg1, %c0_i32 : i32, i32, i32
  }
  func.func @transform_2(%arg0: i32, %arg1: i32) -> (i32, i32) {
    %c0_i32 = arith.constant 0 : i32
    %c0_i32_0 = arith.constant 0 : i32
    return %arg0, %c0_i32 : i32, i32
  }
  func.func @transform_3(%arg0: i32, %arg1: i32) -> (i32, i32) {
    %c0_i32 = arith.constant 0 : i32
    %c0_i32_0 = arith.constant 0 : i32
    %c0_i32_1 = arith.constant 0 : i32
    return %c0_i32, %c0_i32_0 : i32, i32
  }
  func.func @transform_4(%arg0: i32, %arg1: i32) -> (i32, i32) {
    %c0_i32 = arith.constant 0 : i32
    %c0_i32_0 = arith.constant 0 : i32
    %c0_i32_1 = arith.constant 0 : i32
    return %c0_i32, %c0_i32_0 : i32, i32
  }
  func.func @transform_5(%arg0: i32, %arg1: i32) -> (i32, i32) {
    %c0_i32 = arith.constant 0 : i32
    %c0_i32_0 = arith.constant 0 : i32
    return %arg0, %c0_i32 : i32, i32
  }
}

</mosaic_0001>

<bundles_post_ra>
// kernel: tpu_custom_call.1
= control target key start
LH: loop header
LB: loop body
LE: loop exit
PB: predicated region body
PF: predicated region fallthrough
CT: control target
= control target key end

     0   :  { %10 = vsyncpa [#allocation4], 0  ;;  %s359_s0 = inlined_call_operand.vmem [shape: bf16[2,8], index: 0, kind: input, shape index: {}]   ;;  %s360_s1 = inlined_call_operand.hbm [shape: bf16[2,8,32], index: 1, kind: input, shape index: {}]   ;;  %s361_s2 = inlined_call_operand.vmem [shape: f32[2,1], index: 2, kind: input, shape index: {}]   ;;  %s362_s3 = inlined_call_operand.hbm [shape: bf16[32,128], index: 3, kind: input, shape index: {}]   ;;  %s363_s4 = inlined_call_operand.vmem [shape: f32[1,128], index: 4, kind: input, shape index: {}]   ;;  %s364_s5 = inlined_call_operand.hbm [shape: f32[2,128], index: 5, kind: output, shape index: {}]  }
   0x1   :  { %11 = vsyncpa [#allocation7], 0 }
   0x2   :  { %12 = vsyncpa [#allocation5], 0  ;;  %s19_s20 = sshll.u32 %s360_s1, 4  ;;  %s302_s21 = smov [#allocation3]   ;;  %s20_s20 = int_to_ptr.hbm [resolvable:$true] %s19_s20 }
   0x3   :  { %s21_s22 = sshll.u32 %s302_s21, 4  ;;  %s34_s25 = sshll.u32 %s362_s3, 4  ;;  %s22_s22 = int_to_ptr.vmem [resolvable:$true] %s21_s22  ;;  %s35_s25 = int_to_ptr.hbm [resolvable:$true] %s34_s25 }
   0x4   :  { %s303_s26 = smov 64   ;;  %s304_s27 = smov 4  }
   0x5   :  { %27 = dma.hbm_to_vmem [thread:$0]  %s20_s20, 128, %s22_s22, [#allocation4], %s303_s26, %s303_s26, %s304_s27  }
   0x6   :  { %s305_s28 = smov [#allocation6]  }
   0x7   :  { %s36_s29 = sshll.u32 %s305_s28, 4  ;;  %s37_s29 = int_to_ptr.vmem [resolvable:$true] %s36_s29 }
   0x8   :  { %42 = dma.hbm_to_vmem [thread:$0]  %s35_s25, 256, %s37_s29, [#allocation7], %s303_s26, %s303_s26, %s304_s27  }
   0x9   :  { %296 = dma.done.wait [#allocation4], 128  }
   0xa   :  { %297 = vsyncadd [#allocation4], 4294967168 }
   0xb   :  { %298 = dma.done.wait [#allocation7], 256  }
   0xc   :  { %299 = vsyncadd [#allocation7], 4294967040  ;;  %v306_v0 = vmov 0   ;;  %vm72_vm0 = vcmask 1043456   ;;  %v124_v1 = vld [vmem:[%s361_s2] sm:$0x3] }
   0xd   :  { %220 = vset.pattern.permute.xlu0 %v306_v0  ;;  %v64_v2 = vld [vmem:[#allocation3] sm:$0xf]  ;;  %v65_v3 = vld [vmem:[#allocation3 + $0x4] sm:$0xf]  ;;  %v60_v6 = vld [vmem:[%s359_s0] sm:$0x1] }
   0xe   :  { %127 = vperm.xlu0 %220, %v124_v1   ;;  %v74_v4 = vsel %vm72_vm0, %v64_v2, 0  ;;  %v95_v5 = vsel %vm72_vm0, %v65_v3, 0  ;;  %v200_v7 = vpack.i.b16 %v60_v6, %v60_v6  ;;  %v63_v8 = vunpack.i.h.s16 %v60_v6  ;;  %v212_v13 = vld [vmem:[#allocation6 + $0x8] sm:$0xff]   ;;  %v205_v16 = vld [vmem:[#allocation6] sm:$0xff]   ;;  %v221_v40 = vld [vmem:[%s363_s4] ss:$0 sm:$0xff] }
   0xf   :  { %83 = vmatpush.bf16.msra.mxu0 %v74_v4  ;;  %104 = vmatpush.bf16.msra.mxu1 %v95_v5  ;;  %vm68_vm1 = vcmask 64512   ;;  %vm58_vm2 = vcmask 254976   ;;  %v307_v12 = vmov 0.0   ;;  %v211_v14 = vunpack.c.h.bf16 %v212_v13  ;;  %s308_s7 = smov [#allocation8]   ;;  %s189_s11 = sshll.u32 %s364_s5, 4  ;;  %s190_s11 = int_to_ptr.hbm [resolvable:$true] %s189_s11 }
  0x10   :  { %v67_v9 = vperm.slane %v200_v7, 0  ;;  %v89_v10 = vpack.i.b16 %v63_v8, %v63_v8  ;;  %59 = vst.msk [vmem:[#allocation2] sm:$0x3] %vm58_vm2, %v307_v12  ;;  %v210_v15 = vunpack.c.l.bf16 %v212_v13  ;;  %v207_v17 = vunpack.c.h.bf16 %v205_v16  ;;  %s187_s8 = sshll.u32 %s308_s7, 4  ;;  %s188_s8 = int_to_ptr.vmem [resolvable:$true] %s187_s8 }
  0x11   :  { %173 = vmatpush.msra.mxu2 %v211_v14  ;;  %v206_v18 = vunpack.c.l.bf16 %v205_v16  ;;  %vm114_vm3 = vcmask 1041409   ;;  %vm157_vm8 = vcmask 261120  }
  0x12   :  { %201 = vmatmul.msk.bf16.vlgmr.msra.gmra.mxu0 %vm68_vm1, %v67_v9  ;;  %v90_v11 = vperm.slane %v89_v10, 0 }
  0x13   :  { %174 = vmatpush.msra.mxu2 %v210_v15 }
  0x14   :  { %202 = vmatmul.msk.bf16.vlgmr.msra.gmra.mxu1 %vm68_vm1, %v90_v11 }
  0x15   :  { %175 = vmatpush.msra.mxu2 %v207_v17 }
  0x17   :  { %176 = vmatpush.msra.mxu2 %v206_v18  ;;  %v110_v25 = vld [vmem:[#allocation2] sm:$0x3] }
  0x80   :  { %v128_v19 = vpop.permute.xlu0 %127 }
  0x81   :  { %222 = vrcp.f32 %v128_v19  ;;  %vm135_vm4 = vweird.f32 %v128_v19  ;;  %v141_v30 = vand.u32 2147483648, %v128_v19  ;;  %v139_v32 = vand.u32 2147483647, %v128_v19 }
  0x83   :  { %v142_v35 = vor.u32 1.1754944e-38, %v141_v30  ;;  %vm140_vm7 = vcmp.eq.f32.partialorder %v139_v32, 8.507059e+37 }
  0x87   :  { %v223_v20 = vpop.eup %222 }
  0x88   :  { %v131_v21 = vmul.f32 %v223_v20, %v128_v19  ;;  %vm136_vm5 = vweird.f32 %v223_v20 }
  0x89   :  { %vm137_vm6 = vmor %vm135_vm4, %vm136_vm5 }
  0x8a   :  { %v132_v22 = vsub.f32 1.0, %v131_v21 }
  0x8c   :  { %v133_v27 = vmul.f32 %v223_v20, %v132_v22 }
  0x8e   :  { %v134_v31 = vadd.f32 %v223_v20, %v133_v27 }
  0x8f   :  { %v85_v23 = vpop.f32.mrf.mxu0 }
  0x90   :  { %v138_v36 = vsel %vm137_vm6, %v223_v20, %v134_v31 }
  0x91   :  { %v106_v24 = vpop.f32.mrf.mxu1  ;;  %v143_v38 = vsel %vm140_vm7, %v142_v35, %v138_v36 }
  0x92   :  { %v113_v26 = vrot.slane %v106_v24, 7 }
  0x94   :  { %v115_v28 = vsel %vm114_vm3, %v113_v26, %v85_v23 }
  0x95   :  { %v117_v29 = vadd.f32 %v115_v28, %v110_v25 }
  0x97   :  { %119 = vst.msk [vmem:[#allocation2] sm:$0x3] %vm58_vm2, %v117_v29  ;;  %v87_v33 = vpop.f32.mrf.mxu0 }
  0x99   :  { %v108_v34 = vpop.f32.mrf.mxu1 }
  0x9e   :  { %v123_v37 = vld [vmem:[#allocation2] sm:$0x3] }
  0x9f   :  { %v144_v39 = vmul.f32 %v143_v38, %v123_v37 }
  0xa1   :  { %203 = vmatmul.msk.f32.vlgmr.msra.gmra.mxu2 %vm157_vm8, %v144_v39 }
 0x124   :  { %v178_v41 = vpop.f32.mrf.mxu2 }
 0x125   :  { %v179_v42 = vadd.f32 %v221_v40, %v178_v41 }
 0x127   :  { %181 = vst [vmem:[#allocation8] sm:$0x3] %v179_v42 }
 0x128   :  { %192 = dma.vmem_to_hbm [thread:$0]  %s188_s8, 32, %s190_s11, [#allocation5]  }
 0x129   :  { %300 = dma.done.wait [#allocation5], 32  }
 0x12a   :  { %301 = vsyncadd [#allocation5], 4294967264 }
 0x12b   :  { %197 = vsyncpa [#allocation4], 1 }
 0x12c   :  { %198 = vsyncpa [#allocation7], 1 }
 0x12d   :  { %199 = vsyncpa [#allocation5], 1 }

</bundles_post_ra>
